<compile_context>
chip_gen: v7x
topology: tpu7x:2x2x1
jax: 0.10.0
libtpu: 0.0.40
codegen_flags: <defaults>
</compile_context>

<pallas_src>
import functools

import jax
import jax.numpy as jnp
from jax.experimental import pallas as pl
from jax.experimental.pallas import tpu as pltpu

_LANE = 128


# ---------------------------------------------------------------------------
# Fast path: padding == 0 and kernel_size == stride  (the UNet upsample config)
# ---------------------------------------------------------------------------
def _subpixel_kernel(x_ref, w_ref, out_ref, *, n_el, hw_valid):
    # x_ref  : (Bblk, Cin, HWp)       raw input slab (pre-ReLU), zero-padded lanes
    # w_ref  : (K*K*Cout, Cin)        weight rows ordered (kh, kw, co)
    # out_ref: (Bblk, K*K*Cout, HWp)  normalized per-tap conv-transpose results
    bblk = x_ref.shape[0]
    hwp = x_ref.shape[-1]
    lane = jax.lax.broadcasted_iota(jnp.int32, (1, hwp), 1)
    valid = lane < hw_valid                      # mask for zero-padded lanes
    w = w_ref[...]                               # (K*K*Cout, Cin)

    # All samples of the block handled in ONE grid step (amortizes ~0.35us/step).
    for b in range(bblk):                        # static unroll
        x = jnp.maximum(x_ref[b], 0.0)           # ReLU (VPU)
        # Single fused matmul: K*K taps stacked on the output-row axis (MXU).
        y = jnp.dot(w, x, preferred_element_type=jnp.float32)   # (K*K*Cout, HWp)
        # Per-sample normalization (padded lanes are exactly 0 -> sum unaffected).
        mean = jnp.sum(y, axis=(0, 1), keepdims=True) / n_el
        c = y - mean
        c_m = jnp.where(valid, c, 0.0)
        var = jnp.sum(c_m * c_m, axis=(0, 1), keepdims=True) / (n_el - 1)
        inv = pl.reciprocal(jnp.sqrt(var) + 1e-5, approx=True)   # EUP
        out_ref[b] = (c * inv).astype(out_ref.dtype)


def _pick_batch_block(n, per_sample_bytes, budget_bytes=8 << 20, max_block=8):
    """Largest divisor of n (<= max_block) whose double-buffered block fits the budget."""
    best = 1
    for b in range(1, min(n, max_block) + 1):
        if n % b == 0 and 2 * b * per_sample_bytes <= budget_bytes:
            best = b
    return best


def _upsample_subpixel(x, weight):
    N, Cin, H, W = x.shape
    _, Cout, K, _ = weight.shape
    HW = H * W
    HWp = ((HW + _LANE - 1) // _LANE) * _LANE          # lane-dense output stores
    KKCout = K * K * Cout

    x3 = x.reshape(N, Cin, HW)
    if HWp != HW:
        x3 = jnp.pad(x3, ((0, 0), (0, 0), (0, HWp - HW)))
    # wmat[(kh*K + kw)*Cout + co, ci] = weight[ci, co, kh, kw]
    wmat = jnp.transpose(weight, (2, 3, 1, 0)).reshape(KKCout, Cin)

    per_sample_bytes = (Cin + KKCout) * HWp * 4
    bblk = _pick_batch_block(N, per_sample_bytes)

    kernel = functools.partial(_subpixel_kernel, n_el=Cout * K * K * HW, hw_valid=HW)
    flops = 2 * N * KKCout * Cin * HW + 6 * N * KKCout * HW
    bytes_accessed = 4 * (N * Cin * HWp + KKCout * Cin + N * KKCout * HWp)

    y = pl.pallas_call(
        kernel,
        out_shape=jax.ShapeDtypeStruct((N, KKCout, HWp), x.dtype),
        grid_spec=pltpu.PrefetchScalarGridSpec(
            num_scalar_prefetch=0,
            grid=(N // bblk,),
            in_specs=[
                pl.BlockSpec((bblk, Cin, HWp), lambda b: (b, 0, 0)),
                pl.BlockSpec((KKCout, Cin), lambda b: (0, 0)),
            ],
            out_specs=pl.BlockSpec((bblk, KKCout, HWp), lambda b: (b, 0, 0)),
        ),
        compiler_params=pltpu.CompilerParams(
            dimension_semantics=("parallel",),          # v7x: shard batch over 2 TCs
            vmem_limit_bytes=48 * 1024 * 1024,          # headroom even on v7x's 64 MiB
        ),
        cost_estimate=pl.CostEstimate(
            flops=int(flops), transcendentals=2 * N, bytes_accessed=int(bytes_accessed)),
    )(x3, wmat)

    # Zero-cost pixel shuffle: out[n, co, ih*K + kh, iw*K + kw] = y[n, (kh,kw,co), (ih,iw)]
    y = y[:, :, :HW].reshape(N, K, K, Cout, H, W)
    out = jnp.transpose(y, (0, 3, 4, 1, 5, 2)).reshape(N, Cout, H * K, W * K)
    return out


# ---------------------------------------------------------------------------
# General fallback: arbitrary (K, stride, padding) via dilate + fused im2col
# ---------------------------------------------------------------------------
def _general_kernel(xg_ref, w_ref, out_ref, *, n_el):
    # xg_ref: (1, K*K*Cin, HW)   gathered windows of dilated+padded input (pre-ReLU)
    # w_ref : (Cout, K*K*Cin)    flipped + transposed conv_transpose weight
    # out_ref: (1, Cout, HW)
    x = jnp.maximum(xg_ref[0], 0.0)                                   # ReLU (VPU)
    y = jnp.dot(w_ref[...], x, preferred_element_type=jnp.float32)    # one fused MXU matmul
    mean = jnp.sum(y, axis=(0, 1), keepdims=True) / n_el
    c = y - mean
    var = jnp.sum(c * c, axis=(0, 1), keepdims=True) / (n_el - 1)
    inv = pl.reciprocal(jnp.sqrt(var) + 1e-5, approx=True)
    out_ref[0] = (c * inv).astype(out_ref.dtype)


def _upsample_general(x, weight, stride, padding):
    N, Cin, H, W = x.shape
    _, Cout, K, _ = weight.shape
    pad = K - 1 - padding
    assert pad >= 0, "requires padding <= kernel_size - 1"
    Hout = (H - 1) * stride - 2 * padding + K
    Wout = (W - 1) * stride - 2 * padding + K
    HW = Hout * Wout

    Hd, Wd = (H - 1) * stride + 1, (W - 1) * stride + 1
    xd = jnp.zeros((N, Cin, Hd, Wd), x.dtype).at[:, :, ::stride, ::stride].set(x)
    xd = jnp.pad(xd, ((0, 0), (0, 0), (pad, pad), (pad, pad)))
    cols = [xd[:, :, kh:kh + Hout, kw:kw + Wout].reshape(N, 1, Cin, HW)
            for kh in range(K) for kw in range(K)]
    xg = jnp.concatenate(cols, axis=1).reshape(N, K * K * Cin, HW)

    # wt[co, (kh*K + kw)*Cin + ci] = weight[ci, co, K-1-kh, K-1-kw]
    wt = jnp.transpose(weight[:, :, ::-1, ::-1], (1, 2, 3, 0)).reshape(Cout, K * K * Cin)

    kernel = functools.partial(_general_kernel, n_el=Cout * HW)
    out = pl.pallas_call(
        kernel,
        out_shape=jax.ShapeDtypeStruct((N, Cout, HW), x.dtype),
        grid_spec=pltpu.PrefetchScalarGridSpec(
            num_scalar_prefetch=0,
            grid=(N,),
            in_specs=[
                pl.BlockSpec((1, K * K * Cin, HW), lambda n: (n, 0, 0)),
                pl.BlockSpec((Cout, K * K * Cin), lambda n: (0, 0)),
            ],
            out_specs=pl.BlockSpec((1, Cout, HW), lambda n: (n, 0, 0)),
        ),
        compiler_params=pltpu.CompilerParams(dimension_semantics=("parallel",)),
    )(xg, wt)
    return out.reshape(N, Cout, Hout, Wout)


def upsample_forward(x, weight, stride, padding):
    """x: (N, Cin, H, W) NCHW, weight: (Cin, Cout, K, K) (torch conv_transpose2d layout)."""
    N, Cin, H, W = x.shape
    Cin_w, Cout, K, Kw = weight.shape
    assert Cin == Cin_w and K == Kw
    if padding == 0 and K == stride:
        return _upsample_subpixel(x, weight)
    return _upsample_general(x, weight, stride, padding)


# ---------------------------------------------------------------------------
# Pure-JAX reference mirroring the PyTorch module
# ---------------------------------------------------------------------------
def ref_forward(x, weight, stride, padding):
    K = weight.shape[2]
    pad = K - 1 - padding
    relu_x = jnp.maximum(x, 0.0)
    w_conv = jnp.transpose(weight[:, :, ::-1, ::-1], (1, 0, 2, 3))  # (Cout, Cin, K, K)
    convt = jax.lax.conv_general_dilated(
        relu_x, w_conv,
        window_strides=(1, 1),
        padding=((pad, pad), (pad, pad)),
        lhs_dilation=(stride, stride),
        dimension_numbers=("NCHW", "OIHW", "NCHW"),
    )
    n = convt.shape[1] * convt.shape[2] * convt.shape[3]
    mean = jnp.mean(convt, axis=(1, 2, 3), keepdims=True)
    var = jnp.sum((convt - mean) ** 2, axis=(1, 2, 3), keepdims=True) / (n - 1)
    return (convt - mean) / (jnp.sqrt(var) + 1e-5)


if __name__ == "__main__":
    key = jax.random.PRNGKey(0)

    # Config A — the module's instantiation upsample(4, 4, kr=2, s=2, p=0): fast sub-pixel path.
    k1, k2, key = jax.random.split(key, 3)
    x = jax.random.normal(k1, (2, 4, 8, 8), dtype=jnp.float32)
    w = 0.1 * jax.random.normal(k2, (4, 4, 2, 2), dtype=jnp.float32)
    out = upsample_forward(x, w, stride=2, padding=0)
    jax.block_until_ready(out)
    ref = ref_forward(x, w, 2, 0)
    assert out.shape == ref.shape
    if not jnp.allclose(out, ref, atol=2e-3, rtol=2e-3):
        max_err = float(jnp.max(jnp.abs(out - ref)))
        raise ValueError(f"fast-path mismatch vs reference (max abs err {max_err})")

    # Config B — general conv_transpose config (K=3, s=2, p=1): fallback path.
    k3, k4, key = jax.random.split(key, 3)
    x2 = jax.random.normal(k3, (2, 4, 8, 8), dtype=jnp.float32)
    w2 = 0.1 * jax.random.normal(k4, (4, 6, 3, 3), dtype=jnp.float32)
    out2 = upsample_forward(x2, w2, stride=2, padding=1)
    jax.block_until_ready(out2)
    ref2 = ref_forward(x2, w2, 2, 1)
    if not jnp.allclose(out2, ref2, atol=2e-3, rtol=2e-3):
        max_err = float(jnp.max(jnp.abs(out2 - ref2)))
        raise ValueError(f"general-path mismatch vs reference (max abs err {max_err})")

    print("KERNEL_OK")
</pallas_src>

<mosaic_0001>
module attributes {stable_mosaic.version = 11 : i64} {
  func.func @_subpixel_kernel(%arg0: i32, %arg1: memref<2x4x128xf32, #tpu.memory_space<vmem>>, %arg2: memref<16x4xf32, #tpu.memory_space<vmem>>, %arg3: memref<2x16x128xf32, #tpu.memory_space<vmem>>) attributes {dimension_semantics = [#tpu.dimension_semantics<parallel>], iteration_bounds = array<i64: 1>, scalar_prefetch = 0 : i64, scratch_operands = 0 : i64, tpu.core_type = #tpu.core_type<tc>, window_params = [{transform_indices = @transform_0, window_bounds = array<i64: 2, 4, 128>}, {pipeline_mode = #tpu.pipeline_mode<synchronous>, transform_indices = @transform_1, window_bounds = array<i64: 16, 4>}, {transform_indices = @transform_2, window_bounds = array<i64: 2, 16, 128>}]} {
    %0 = tpu.iota {dimensions = array<i32: 1>} : vector<1x128xi32>
    %c64_i32 = arith.constant 64 : i32
    %1 = vector.broadcast %c64_i32 : i32 to vector<1x128xi32>
    %2 = arith.cmpi slt, %0, %1 : vector<1x128xi32>
    %c0 = arith.constant 0 : index
    %c0_0 = arith.constant 0 : index
    %3 = vector.load %arg2[%c0, %c0_0] : memref<16x4xf32, #tpu.memory_space<vmem>>, vector<16x4xf32>
    %c0_1 = arith.constant 0 : index
    %c0_2 = arith.constant 0 : index
    %c0_3 = arith.constant 0 : index
    %4 = vector.load %arg1[%c0_1, %c0_2, %c0_3] : memref<2x4x128xf32, #tpu.memory_space<vmem>>, vector<1x4x128xf32>
    %5 = vector.shape_cast %4 : vector<1x4x128xf32> to vector<4x128xf32>
    %cst = arith.constant 0.000000e+00 : f32
    %6 = vector.broadcast %cst : f32 to vector<4x128xf32>
    %7 = arith.maximumf %5, %6 : vector<4x128xf32>
    %cst_4 = arith.constant dense<0.000000e+00> : vector<16x128xf32>
    %8 = tpu.matmul %3, %7, %cst_4 {dimension_numbers = #tpu.dot_dimension_numbers<[1], [0], [0], [1], [0, 0, 1, 1], [], []>} : vector<16x4xf32>, vector<4x128xf32>, vector<16x128xf32> -> vector<16x128xf32>
    %9 = vector.shape_cast %8 : vector<16x128xf32> to vector<1x16x128xf32>
    %cst_5 = arith.constant dense<0.000000e+00> : vector<1xf32>
    %10 = vector.multi_reduction <add>, %9, %cst_5 [1, 2] : vector<1x16x128xf32> to vector<1xf32>
    %11 = vector.shape_cast %10 : vector<1xf32> to vector<1x1x1xf32>
    %12 = vector.extract %11[0, 0, 0] : f32 from vector<1x1x1xf32>
    %13 = vector.broadcast %12 : f32 to vector<1x1xf32>
    %cst_6 = arith.constant 1.024000e+03 : f32
    %14 = vector.broadcast %cst_6 : f32 to vector<1x1xf32>
    %15 = arith.divf %13, %14 : vector<1x1xf32>
    %16 = vector.broadcast %15 : vector<1x1xf32> to vector<16x128xf32>
    %17 = arith.subf %8, %16 : vector<16x128xf32>
    %cst_7 = arith.constant 0.000000e+00 : f32
    %18 = vector.shape_cast %2 : vector<1x128xi1> to vector<1x128xi1>
    %19 = vector.broadcast %18 : vector<1x128xi1> to vector<16x128xi1>
    %20 = vector.broadcast %cst_7 : f32 to vector<16x128xf32>
    %21 = arith.select %19, %17, %20 : vector<16x128xi1>, vector<16x128xf32>
    %22 = arith.mulf %21, %21 : vector<16x128xf32>
    %23 = vector.shape_cast %22 : vector<16x128xf32> to vector<1x16x128xf32>
    %cst_8 = arith.constant dense<0.000000e+00> : vector<1xf32>
    %24 = vector.multi_reduction <add>, %23, %cst_8 [1, 2] : vector<1x16x128xf32> to vector<1xf32>
    %25 = vector.shape_cast %24 : vector<1xf32> to vector<1x1x1xf32>
    %26 = vector.extract %25[0, 0, 0] : f32 from vector<1x1x1xf32>
    %27 = vector.broadcast %26 : f32 to vector<1x1xf32>
    %cst_9 = arith.constant 1.023000e+03 : f32
    %28 = vector.broadcast %cst_9 : f32 to vector<1x1xf32>
    %29 = arith.divf %27, %28 : vector<1x1xf32>
    %30 = math.sqrt %29 : vector<1x1xf32>
    %cst_10 = arith.constant 9.99999974E-6 : f32
    %31 = vector.broadcast %cst_10 : f32 to vector<1x1xf32>
    %32 = arith.addf %30, %31 : vector<1x1xf32>
    %33 = tpu.reciprocal %32 {approx = true} : vector<1x1xf32> -> vector<1x1xf32>
    %34 = vector.broadcast %33 : vector<1x1xf32> to vector<16x128xf32>
    %35 = arith.mulf %17, %34 : vector<16x128xf32>
    %c0_11 = arith.constant 0 : index
    %c0_12 = arith.constant 0 : index
    %c0_13 = arith.constant 0 : index
    %36 = vector.load %arg3[%c0_11, %c0_12, %c0_13] : memref<2x16x128xf32, #tpu.memory_space<vmem>>, vector<1x16x128xf32>
    %37 = vector.shape_cast %36 : vector<1x16x128xf32> to vector<16x128xf32>
    %38 = vector.shape_cast %35 : vector<16x128xf32> to vector<1x16x128xf32>
    tpu.vector_store %arg3[%c0_11, %c0_12, %c0_13], %38 {strides = array<i32>} : memref<2x16x128xf32, #tpu.memory_space<vmem>>, vector<1x16x128xf32>,
    %c1 = arith.constant 1 : index
    %c0_14 = arith.constant 0 : index
    %c0_15 = arith.constant 0 : index
    %39 = vector.load %arg1[%c1, %c0_14, %c0_15] : memref<2x4x128xf32, #tpu.memory_space<vmem>>, vector<1x4x128xf32>
    %40 = vector.shape_cast %39 : vector<1x4x128xf32> to vector<4x128xf32>
    %cst_16 = arith.constant 0.000000e+00 : f32
    %41 = vector.broadcast %cst_16 : f32 to vector<4x128xf32>
    %42 = arith.maximumf %40, %41 : vector<4x128xf32>
    %cst_17 = arith.constant dense<0.000000e+00> : vector<16x128xf32>
    %43 = tpu.matmul %3, %42, %cst_17 {dimension_numbers = #tpu.dot_dimension_numbers<[1], [0], [0], [1], [0, 0, 1, 1], [], []>} : vector<16x4xf32>, vector<4x128xf32>, vector<16x128xf32> -> vector<16x128xf32>
    %44 = vector.shape_cast %43 : vector<16x128xf32> to vector<1x16x128xf32>
    %cst_18 = arith.constant dense<0.000000e+00> : vector<1xf32>
    %45 = vector.multi_reduction <add>, %44, %cst_18 [1, 2] : vector<1x16x128xf32> to vector<1xf32>
    %46 = vector.shape_cast %45 : vector<1xf32> to vector<1x1x1xf32>
    %47 = vector.extract %46[0, 0, 0] : f32 from vector<1x1x1xf32>
    %48 = vector.broadcast %47 : f32 to vector<1x1xf32>
    %cst_19 = arith.constant 1.024000e+03 : f32
    %49 = vector.broadcast %cst_19 : f32 to vector<1x1xf32>
    %50 = arith.divf %48, %49 : vector<1x1xf32>
    %51 = vector.broadcast %50 : vector<1x1xf32> to vector<16x128xf32>
    %52 = arith.subf %43, %51 : vector<16x128xf32>
    %cst_20 = arith.constant 0.000000e+00 : f32
    %53 = vector.shape_cast %2 : vector<1x128xi1> to vector<1x128xi1>
    %54 = vector.broadcast %53 : vector<1x128xi1> to vector<16x128xi1>
    %55 = vector.broadcast %cst_20 : f32 to vector<16x128xf32>
    %56 = arith.select %54, %52, %55 : vector<16x128xi1>, vector<16x128xf32>
    %57 = arith.mulf %56, %56 : vector<16x128xf32>
    %58 = vector.shape_cast %57 : vector<16x128xf32> to vector<1x16x128xf32>
    %cst_21 = arith.constant dense<0.000000e+00> : vector<1xf32>
    %59 = vector.multi_reduction <add>, %58, %cst_21 [1, 2] : vector<1x16x128xf32> to vector<1xf32>
    %60 = vector.shape_cast %59 : vector<1xf32> to vector<1x1x1xf32>
    %61 = vector.extract %60[0, 0, 0] : f32 from vector<1x1x1xf32>
    %62 = vector.broadcast %61 : f32 to vector<1x1xf32>
    %cst_22 = arith.constant 1.023000e+03 : f32
    %63 = vector.broadcast %cst_22 : f32 to vector<1x1xf32>
    %64 = arith.divf %62, %63 : vector<1x1xf32>
    %65 = math.sqrt %64 : vector<1x1xf32>
    %cst_23 = arith.constant 9.99999974E-6 : f32
    %66 = vector.broadcast %cst_23 : f32 to vector<1x1xf32>
    %67 = arith.addf %65, %66 : vector<1x1xf32>
    %68 = tpu.reciprocal %67 {approx = true} : vector<1x1xf32> -> vector<1x1xf32>
    %69 = vector.broadcast %68 : vector<1x1xf32> to vector<16x128xf32>
    %70 = arith.mulf %52, %69 : vector<16x128xf32>
    %c1_24 = arith.constant 1 : index
    %c0_25 = arith.constant 0 : index
    %c0_26 = arith.constant 0 : index
    %71 = vector.load %arg3[%c1_24, %c0_25, %c0_26] : memref<2x16x128xf32, #tpu.memory_space<vmem>>, vector<1x16x128xf32>
    %72 = vector.shape_cast %71 : vector<1x16x128xf32> to vector<16x128xf32>
    %73 = vector.shape_cast %70 : vector<16x128xf32> to vector<1x16x128xf32>
    tpu.vector_store %arg3[%c1_24, %c0_25, %c0_26], %73 {strides = array<i32>} : memref<2x16x128xf32, #tpu.memory_space<vmem>>, vector<1x16x128xf32>,
    return
  }
  func.func @transform_0(%arg0: i32) -> (i32, i32, i32) {
    %c0_i32 = arith.constant 0 : i32
    %c0_i32_0 = arith.constant 0 : i32
    %c0_i32_1 = arith.constant 0 : i32
    return %arg0, %c0_i32, %c0_i32_0 : i32, i32, i32
  }
  func.func @transform_1(%arg0: i32) -> (i32, i32) {
    %c0_i32 = arith.constant 0 : i32
    %c0_i32_0 = arith.constant 0 : i32
    %c0_i32_1 = arith.constant 0 : i32
    return %c0_i32, %c0_i32_0 : i32, i32
  }
  func.func @transform_2(%arg0: i32) -> (i32, i32, i32) {
    %c0_i32 = arith.constant 0 : i32
    %c0_i32_0 = arith.constant 0 : i32
    %c0_i32_1 = arith.constant 0 : i32
    return %arg0, %c0_i32, %c0_i32_0 : i32, i32, i32
  }
}

</mosaic_0001>

<bundles_post_ra>
// kernel: tpu_custom_call.1
= control target key start
LH: loop header
LB: loop body
LE: loop exit
PB: predicated region body
PF: predicated region fallthrough
CT: control target
= control target key end

     0   :  { %vm26_vm0 = vcmask 1043456   ;;  %vm19_vm1 = vcmask 31744   ;;  %s405_s0 = inlined_call_operand.vmem [shape: f32[2,4,128], index: 0, kind: input, shape index: {}]   ;;  %s406_s1 = inlined_call_operand.vmem [shape: f32[16,4], index: 1, kind: input, shape index: {}]   ;;  %s407_s2 = inlined_call_operand.hbm [shape: f32[2,16,128], index: 2, kind: output, shape index: {}]  }
   0x1   :  { %v17_v0 = vld [vmem:[%s405_s0] sm:$0xf]  ;;  %v296_v3 = vld [vmem:[%s405_s0 + $0x4] sm:$0xf] }
   0x2   :  { %v15_v1 = vld [vmem:[%s406_s1] sm:$0xff]  ;;  %v18_v2 = vmax.f32 %v17_v0, 0.0 }
   0x3   :  { %308 = vmatprep.mubr.msk.f32.mxu0 %vm19_vm1, %v15_v1  ;;  %313 = vmatprep.mubr.msk.f32.mxu1 %vm19_vm1, %v15_v1 }
   0x4   :  { %7 = vsyncpa [#allocation3], 0  ;;  %v16_v4 = vld [vmem:[%s406_s1 + $0x8] sm:$0xff]  ;;  %v154_v5 = vmax.f32 %v296_v3, 0.0  ;;  %306 = vmatprep.subr.msk.mxu0 %vm26_vm0, %v18_v2  ;;  %v12_v19 = vlaneseq  ;;  %s359_s19 = smov [#allocation2]  }
   0x5   :  { %307 = vmatpush3.msk.msra.mxu0 %vm26_vm0, %v18_v2  ;;  %s282_s20 = sshll.u32 %s359_s19, 4  ;;  %s283_s20 = int_to_ptr.vmem [resolvable:$true] %s282_s20 }
   0x6   :  { %311 = vmatprep.subr.msk.mxu1 %vm26_vm0, %v154_v5  ;;  %309 = vmatmul.mubr.msk.f32.vlgmr.msra.gmra.mrb[0].mxu0 %vm19_vm1, %v16_v4  ;;  %v13_v20 = vand.u32 127, %v12_v19  ;;  %s335_s21 = scalar_lea.vmem %s283_s20, 512  ;;  %p340_p1 = scmp.lt.s32.totalorder %s283_s20, %s283_s20 }
   0x7   :  { %312 = vmatpush3.msk.msra.mxu1 %vm26_vm0, %v154_v5  ;;  %p336_p0 = scmp.ne.s32.totalorder %s283_s20, %s335_s21  ;;  %p341_p2 = scmp.lt.s32.totalorder %s335_s21, %s335_s21 }
   0x8   :  { %314 = vmatmul.mubr.msk.f32.vlgmr.msra.gmra.mrb[0].mxu1 %vm19_vm1, %v16_v4  ;;  %vm14_vm2 = vcmp.lt.s32.totalorder %v13_v20, 64 }
   0x9   :  { %p342_p3 = por %p341_p2, %p340_p1 }
   0xb   :  { %p343_p4 = pnand %p342_p3, %p336_p0 }
  0xd9   :  { %v310_v6 = vpop.f32.mrb[0].mxu0 }
  0xda   :  { %v96_v7 = vpop.f32.mrb[1].mxu0 }
  0xdb   :  { %v105_v8 = vadd.f32 %v310_v6, %v96_v7  ;;  %v315_v9 = vpop.f32.mrb[0].mxu1 }
  0xdc   :  { %v224_v10 = vpop.f32.mrb[1].mxu1 }
  0xdd   :  { %106 = vadd.xlane.f32.xlu0 %v105_v8  ;;  %v233_v11 = vadd.f32 %v315_v9, %v224_v10 }
  0xdf   :  { %234 = vadd.xlane.f32.xlu1 %v233_v11 }
 0x16a   :  { %v107_v12 = vpop.xlane.xlu0 %106 }
 0x16b   :  { %v108_v13 = vrot.slane %v107_v12, 4 }
 0x16c   :  { %v235_v30 = vpop.xlane.xlu1 %234 }
 0x16d   :  { %v109_v14 = vadd.f32 %v108_v13, %v107_v12  ;;  %v236_v31 = vrot.slane %v235_v30, 4 }
 0x16f   :  { %v110_v15 = vrot.slane %v109_v14, 2  ;;  %v237_v32 = vadd.f32 %v236_v31, %v235_v30 }
 0x171   :  { %v111_v16 = vadd.f32 %v110_v15, %v109_v14  ;;  %v238_v33 = vrot.slane %v237_v32, 2 }
 0x173   :  { %v112_v17 = vrot.slane %v111_v16, 1  ;;  %v239_v37 = vadd.f32 %v238_v33, %v237_v32 }
 0x175   :  { %v113_v18 = vadd.f32 %v112_v17, %v111_v16  ;;  %v240_v40 = vrot.slane %v239_v37, 1 }
 0x177   :  { %316 = vpush %v113_v18  ;;  %v241_v43 = vadd.f32 %v240_v40, %v239_v37 }
 0x1a8   :  { %s317_s0 = spop %316 }
 0x1a9   :  { %v115_v21 = vstv %s317_s0 }
 0x1aa   :  { %v117_v22 = vmul.f32 0.0009765625, %v115_v21 }
 0x1ac   :  { %v118_v23 = vsub.f32 %v96_v7, %v117_v22  ;;  %v119_v24 = vsub.f32 %v310_v6, %v117_v22 }
 0x1ae   :  { %v122_v25 = vsel %vm14_vm2, %v118_v23, 0.0  ;;  %v123_v26 = vsel %vm14_vm2, %v119_v24, 0.0 }
 0x1af   :  { %v124_v27 = vmul.f32 %v122_v25, %v122_v25  ;;  %v125_v28 = vmul.f32 %v123_v26, %v123_v26 }
 0x1b1   :  { %v126_v29 = vadd.f32 %v125_v28, %v124_v27 }
 0x1b3   :  { %127 = vadd.xlane.f32.xlu0 %v126_v29 }
 0x240   :  { %v128_v34 = vpop.xlane.xlu0 %127 }
 0x241   :  { %v129_v35 = vrot.slane %v128_v34, 4 }
 0x243   :  { %v130_v36 = vadd.f32 %v129_v35, %v128_v34 }
 0x245   :  { %v131_v38 = vrot.slane %v130_v36, 2 }
 0x247   :  { %v132_v39 = vadd.f32 %v131_v38, %v130_v36 }
 0x249   :  { %v133_v41 = vrot.slane %v132_v39, 1 }
 0x24b   :  { %v134_v42 = vadd.f32 %v133_v41, %v132_v39 }
 0x24d   :  { %318 = vpush %v134_v42 }
 0x24e   :  { %320 = vpush %v241_v43 }
 0x27e   :  { %s319_s1 = spop %318 }
 0x27f   :  { %v136_v44 = vstv %s319_s1  ;;  %s321_s17 = spop %320 }
 0x280   :  { %v138_v45 = vmul.f32 0.0009775171, %v136_v44  ;;  %v243_v46 = vstv %s321_s17 }
 0x281   :  { %v244_v47 = vmul.f32 0.0009765625, %v243_v46 }
 0x282   :  { %327 = vrsqrt.f32 %v138_v45  ;;  %vm141_vm3 = vcmp.eq.f32.partialorder %v138_v45, inf  ;;  %v144_v57 = vand.u32 2147483648, %v138_v45  ;;  %vm143_vm4 = vcmp.eq.f32.partialorder %v138_v45, 0.0 }
 0x283   :  { %v245_v48 = vsub.f32 %v224_v10, %v244_v47  ;;  %v246_v49 = vsub.f32 %v315_v9, %v244_v47 }
 0x285   :  { %v247_v50 = vsel %vm14_vm2, %v245_v48, 0.0  ;;  %v248_v51 = vsel %vm14_vm2, %v246_v49, 0.0 }
 0x286   :  { %v249_v52 = vmul.f32 %v247_v50, %v247_v50  ;;  %v250_v53 = vmul.f32 %v248_v51, %v248_v51 }
 0x288   :  { %v251_v54 = vadd.f32 %v250_v53, %v249_v52 }
 0x28a   :  { %252 = vadd.xlane.f32.xlu1 %v251_v54 }
 0x28c   :  { %v328_v55 = vpop.eup %327 }
 0x28d   :  { %v140_v56 = vmul.f32 %v328_v55, %v138_v45 }
 0x28f   :  { %v142_v58 = vsel %vm141_vm3, %v138_v45, %v140_v56 }
 0x290   :  { %v145_v59 = vsel %vm143_vm4, %v144_v57, %v142_v58 }
 0x291   :  { %v146_v60 = vadd.f32 1e-05, %v145_v59 }
 0x293   :  { %329 = vrcp.f32 %v146_v60 }
 0x29d   :  { %v330_v61 = vpop.eup %329 }
 0x29e   :  { %v148_v62 = vmul.f32 %v330_v61, %v118_v23  ;;  %v149_v63 = vmul.f32 %v330_v61, %v119_v24 }
 0x2a0   :  { %150 = vst [vmem:[#allocation2] sm:$0xff] %v148_v62  ;;  %151 = vst [vmem:[#allocation2 + $0x8] sm:$0xff] %v149_v63 }
 0x317   :  { %v253_v0 = vpop.xlane.xlu1 %252 }
 0x318   :  { %v254_v1 = vrot.slane %v253_v0, 4 }
 0x31a   :  { %v255_v2 = vadd.f32 %v254_v1, %v253_v0 }
 0x31c   :  { %v256_v3 = vrot.slane %v255_v2, 2 }
 0x31e   :  { %v257_v4 = vadd.f32 %v256_v3, %v255_v2 }
 0x320   :  { %v258_v5 = vrot.slane %v257_v4, 1 }
 0x322   :  { %v259_v6 = vadd.f32 %v258_v5, %v257_v4 }
 0x324   :  { %322 = vpush %v259_v6 }
 0x355   :  { %s323_s18 = spop %322 }
 0x356   :  { %v261_v7 = vstv %s323_s18 }
 0x357   :  { %v262_v8 = vmul.f32 0.0009775171, %v261_v7 }
 0x359   :  { %331 = vrsqrt.f32 %v262_v8  ;;  %vm265_vm5 = vcmp.eq.f32.partialorder %v262_v8, inf  ;;  %v268_v11 = vand.u32 2147483648, %v262_v8  ;;  %vm267_vm6 = vcmp.eq.f32.partialorder %v262_v8, 0.0 }
 0x363   :  { %v332_v9 = vpop.eup %331 }
 0x364   :  { %v264_v10 = vmul.f32 %v332_v9, %v262_v8 }
 0x366   :  { %v266_v12 = vsel %vm265_vm5, %v262_v8, %v264_v10 }
 0x367   :  { %v269_v13 = vsel %vm267_vm6, %v268_v11, %v266_v12 }
 0x368   :  { %v270_v14 = vadd.f32 1e-05, %v269_v13 }
 0x36a   :  { %333 = vrcp.f32 %v270_v14 }
 0x374   :  { %v334_v15 = vpop.eup %333 }
 0x375   :  { %v272_v16 = vmul.f32 %v334_v15, %v245_v48  ;;  %v273_v17 = vmul.f32 %v334_v15, %v246_v49 }
 0x377   :  { %275 = vst [vmem:[#allocation2 + $0x10] sm:$0xff] %v272_v16  ;;  %276 = vst [vmem:[#allocation2 + $0x18] sm:$0xff] %v273_v17 }
 0x378   :  { %346 = shalt.err (!%p343_p4)
}
 0x379   :  { %s347_s24 = scalar_lea.hbm %s407_s2, 512 }
 0x37a   :  { %p348_p5 = scmp.ne.s32.totalorder %s407_s2, %s347_s24  ;;  %p351_p6 = scmp.lt.u32.totalorder %s347_s24, %s407_s2 }
 0x37c   :  { %p353_p7 = pnand %p351_p6, %p348_p5 }
 0x37e   :  { %356 = shalt.err (!%p353_p7)
}
 0x37f   :  { %s360_s29 = smov 128   ;;  %s361_s30 = smov 8  }
 0x380   :  { %288 = dma.vmem_to_hbm [thread:$0]  %s283_s20, 512, %s407_s2, [#allocation3], %s360_s29, %s360_s29, %s361_s30  }
 0x381   :  { %357 = dma.done.wait [#allocation3], 512  }
 0x382   :  { %358 = vsyncadd [#allocation3], 4294966784 }
 0x383   :  { %292 = vsyncpa [#allocation3], 1 }

</bundles_post_ra>
